<compile_context>
chip_gen: v7x
topology: tpu7x:2x2x1
jax: 0.10.0
libtpu: 0.0.40
codegen_flags: <defaults>
</compile_context>

<pallas_src>
import functools

import jax
import jax.numpy as jnp
from jax.experimental import pallas as pl
from jax.experimental.pallas import tpu as pltpu


def _round_up(x, m):
    return (x + m - 1) // m * m


# ------------------------------ Pallas kernel ------------------------------ #

def _flownet_kernel(x_ref, w1_ref, b1_ref, w2_ref, b2_ref, w3_ref, b3_ref,
                    sc_ref, perm_ref, y_ref, ld_ref, *, nblocks, half):
    """Fused FlowNet forward for one (tm, nz) row-tile.

    x_ref:    (tm, nz)
    w1_ref:   (nblocks, nz//2, hidden)      b1_ref: (nblocks, 1, hidden)
    w2_ref:   (nblocks, hidden, hidden)     b2_ref: (nblocks, 1, hidden)
    w3_ref:   (nblocks, hidden, nz)         b3_ref: (nblocks, 1, nz)
    sc_ref:   (nblocks, 1, nz)              (Scale module parameter)
    perm_ref: (nblocks-1, nz, nz)           (permutation matrices)
    y_ref:    (tm, nz)                      ld_ref: (tm, nblocks)
    """
    x = x_ref[...]
    logdets = []
    for blk in range(nblocks):                      # static unrolled loop
        z1 = x[:, :half]
        z2 = x[:, half:]

        # net = Linear -> ReLU -> Linear -> ReLU -> Linear -> Scale
        h = jnp.dot(z1, w1_ref[blk], preferred_element_type=jnp.float32)
        h = jnp.maximum(h + b1_ref[blk], 0.0)
        h = jnp.dot(h, w2_ref[blk], preferred_element_type=jnp.float32)
        h = jnp.maximum(h + b2_ref[blk], 0.0)
        net = jnp.dot(h, w3_ref[blk], preferred_element_type=jnp.float32)
        net = (net + b3_ref[blk]) * jnp.exp(sc_ref[blk] * 3.0)   # Scale module

        log_s = net[:, :half]
        t = net[:, half:]
        s = jax.nn.sigmoid(log_s + 2.0)

        y2 = (z2 + t) * s
        y = jnp.concatenate([z1, y2], axis=1)       # [y1, y2]
        logdets.append(jnp.sum(jnp.log(s), axis=1, keepdims=True))

        if blk < nblocks - 1:
            # Channel permutation as a matmul with a precomputed (nz, nz)
            # permutation matrix (x @ P == x[:, perm]); avoids lane gathers.
            x = jnp.dot(y, perm_ref[blk], preferred_element_type=jnp.float32)
        else:
            x = y

    y_ref[...] = x
    ld_ref[...] = jnp.concatenate(logdets, axis=1)


# ------------------------------- Wrapper ----------------------------------- #

def flownet_forward(params, x):
    """x: (B, nz) float32 -> (y: (B, nz), logdets: (B, nblocks))."""
    x = x.astype(jnp.float32)
    b, nz = x.shape
    nblocks, half, _ = params["w1"].shape

    # Batch-row tiling: multiple of 8 sublanes; grid axis is "parallel" so
    # v7x shards row-tiles across its 2 TensorCores.
    b8 = _round_up(b, 8)
    tm = min(256, b8)
    b_pad = _round_up(b8, tm)
    if b_pad != b:
        x = jnp.pad(x, ((0, b_pad - b), (0, 0)))
    grid = (b_pad // tm,)

    full = lambda arr: pl.BlockSpec(arr.shape, lambda i: (0,) * arr.ndim)

    y, logdets = pl.pallas_call(
        functools.partial(_flownet_kernel, nblocks=nblocks, half=half),
        grid=grid,
        in_specs=[
            pl.BlockSpec((tm, nz), lambda i: (i, 0)),
            full(params["w1"]), full(params["b1"]),
            full(params["w2"]), full(params["b2"]),
            full(params["w3"]), full(params["b3"]),
            full(params["scale"]), full(params["perm_mat"]),
        ],
        out_specs=[
            pl.BlockSpec((tm, nz), lambda i: (i, 0)),
            pl.BlockSpec((tm, nblocks), lambda i: (i, 0)),
        ],
        out_shape=(
            jax.ShapeDtypeStruct((b_pad, nz), jnp.float32),
            jax.ShapeDtypeStruct((b_pad, nblocks), jnp.float32),
        ),
        compiler_params=pltpu.CompilerParams(
            dimension_semantics=("parallel",),
            vmem_limit_bytes=32 * 1024 * 1024,
        ),
    )(x, params["w1"], params["b1"], params["w2"], params["b2"],
      params["w3"], params["b3"], params["scale"], params["perm_mat"])

    return y[:b], logdets[:b]


flownet_forward_jit = jax.jit(flownet_forward)


# ----------------------------- Params / reference -------------------------- #

def init_params(key, nz, hidden, nblocks):
    assert nz % 4 == 0
    half = nz // 2
    ks = jax.random.split(key, 8)

    def rnd(k, shape, scale):
        return (scale * jax.random.normal(k, shape, jnp.float32)).astype(jnp.float32)

    params = {
        # Weights stored as (in, out): no transpose in the forward pass.
        "w1": rnd(ks[0], (nblocks, half, hidden), 1.0 / (half ** 0.5)),
        "b1": rnd(ks[1], (nblocks, 1, hidden), 0.01),
        "w2": rnd(ks[2], (nblocks, hidden, hidden), 1.0 / (hidden ** 0.5)),
        "b2": rnd(ks[3], (nblocks, 1, hidden), 0.01),
        "w3": rnd(ks[4], (nblocks, hidden, nz), 1.0 / (hidden ** 0.5)),
        "b3": rnd(ks[5], (nblocks, 1, nz), 0.01),
        # Scale module parameter (PyTorch inits it at zeros; small random here
        # so the exp(scale*3) path is actually exercised).
        "scale": rnd(ks[6], (nblocks, 1, nz), 0.1),
    }

    # Permutation layers -> one-time permutation matrices (x @ P == x[:, perm]).
    perm_keys = jax.random.split(ks[7], max(nblocks - 1, 1))
    eye = jnp.eye(nz, dtype=jnp.float32)
    mats = []
    for i in range(nblocks - 1):
        perm = jax.random.permutation(perm_keys[i], nz)
        mats.append(eye[perm].T)
    params["perm_mat"] = jnp.stack(mats, axis=0)
    return params


def flownet_ref(params, x):
    """Pure-JAX reference matching the PyTorch FlowNet.forward semantics."""
    nblocks = params["w1"].shape[0]
    half = x.shape[1] // 2
    out = x
    logdets = []
    for blk in range(nblocks):
        z1, z2 = out[:, :half], out[:, half:]
        h = jnp.maximum(z1 @ params["w1"][blk] + params["b1"][blk], 0.0)
        h = jnp.maximum(h @ params["w2"][blk] + params["b2"][blk], 0.0)
        net = (h @ params["w3"][blk] + params["b3"][blk]) * jnp.exp(params["scale"][blk] * 3.0)
        log_s, t = net[:, :half], net[:, half:]
        s = jax.nn.sigmoid(log_s + 2.0)
        y = jnp.concatenate([z1, (z2 + t) * s], axis=1)
        logdets.append(jnp.sum(jnp.log(s), axis=1))
        out = y @ params["perm_mat"][blk] if blk < nblocks - 1 else y
    return out, jnp.stack(logdets, axis=1)


if __name__ == "__main__":
    nz, hidden, nblocks, batch = 32, 64, 4, 8
    key = jax.random.PRNGKey(0)
    kp, kx = jax.random.split(key)
    params = init_params(kp, nz, hidden, nblocks)
    x = jax.random.normal(kx, (batch, nz), jnp.float32)

    y, logdets = flownet_forward_jit(params, x)
    jax.block_until_ready((y, logdets))
    assert y.shape == (batch, nz) and logdets.shape == (batch, nblocks)

    y_ref, ld_ref = flownet_ref(params, x)
    assert jnp.allclose(y, y_ref, atol=1e-2, rtol=1e-2)
    assert jnp.allclose(logdets, ld_ref, atol=1e-2, rtol=1e-2)
    print("KERNEL_OK")
</pallas_src>

<mosaic_0001>
module attributes {stable_mosaic.version = 11 : i64} {
  func.func @_flownet_kernel(%arg0: i32, %arg1: memref<8x32xf32, #tpu.memory_space<vmem>>, %arg2: memref<4x16x64xf32, #tpu.memory_space<vmem>>, %arg3: memref<4x1x64xf32, #tpu.memory_space<vmem>>, %arg4: memref<4x64x64xf32, #tpu.memory_space<vmem>>, %arg5: memref<4x1x64xf32, #tpu.memory_space<vmem>>, %arg6: memref<4x64x32xf32, #tpu.memory_space<vmem>>, %arg7: memref<4x1x32xf32, #tpu.memory_space<vmem>>, %arg8: memref<4x1x32xf32, #tpu.memory_space<vmem>>, %arg9: memref<3x32x32xf32, #tpu.memory_space<vmem>>, %arg10: memref<8x32xf32, #tpu.memory_space<vmem>>, %arg11: memref<8x4xf32, #tpu.memory_space<vmem>>) attributes {dimension_semantics = [#tpu.dimension_semantics<parallel>], iteration_bounds = array<i64: 1>, scalar_prefetch = 0 : i64, scratch_operands = 0 : i64, tpu.core_type = #tpu.core_type<tc>, window_params = [{transform_indices = @transform_0, window_bounds = array<i64: 8, 32>}, {pipeline_mode = #tpu.pipeline_mode<synchronous>, transform_indices = @transform_1, window_bounds = array<i64: 4, 16, 64>}, {pipeline_mode = #tpu.pipeline_mode<synchronous>, transform_indices = @transform_2, window_bounds = array<i64: 4, 1, 64>}, {pipeline_mode = #tpu.pipeline_mode<synchronous>, transform_indices = @transform_3, window_bounds = array<i64: 4, 64, 64>}, {pipeline_mode = #tpu.pipeline_mode<synchronous>, transform_indices = @transform_4, window_bounds = array<i64: 4, 1, 64>}, {pipeline_mode = #tpu.pipeline_mode<synchronous>, transform_indices = @transform_5, window_bounds = array<i64: 4, 64, 32>}, {pipeline_mode = #tpu.pipeline_mode<synchronous>, transform_indices = @transform_6, window_bounds = array<i64: 4, 1, 32>}, {pipeline_mode = #tpu.pipeline_mode<synchronous>, transform_indices = @transform_7, window_bounds = array<i64: 4, 1, 32>}, {pipeline_mode = #tpu.pipeline_mode<synchronous>, transform_indices = @transform_8, window_bounds = array<i64: 3, 32, 32>}, {transform_indices = @transform_9, window_bounds = array<i64: 8, 32>}, {transform_indices = @transform_10, window_bounds = array<i64: 8, 4>}]} {
    %c0 = arith.constant 0 : index
    %c0_0 = arith.constant 0 : index
    %0 = vector.load %arg1[%c0, %c0_0] : memref<8x32xf32, #tpu.memory_space<vmem>>, vector<8x32xf32>
    %1 = vector.extract_strided_slice %0 {offsets = [0, 0], sizes = [8, 16], strides = [1, 1]} : vector<8x32xf32> to vector<8x16xf32>
    %2 = vector.extract_strided_slice %0 {offsets = [0, 16], sizes = [8, 16], strides = [1, 1]} : vector<8x32xf32> to vector<8x16xf32>
    %c0_1 = arith.constant 0 : index
    %c0_2 = arith.constant 0 : index
    %c0_3 = arith.constant 0 : index
    %3 = vector.load %arg2[%c0_1, %c0_2, %c0_3] : memref<4x16x64xf32, #tpu.memory_space<vmem>>, vector<1x16x64xf32>
    %4 = vector.shape_cast %3 : vector<1x16x64xf32> to vector<16x64xf32>
    %cst = arith.constant dense<0.000000e+00> : vector<8x64xf32>
    %5 = tpu.matmul %1, %4, %cst {dimension_numbers = #tpu.dot_dimension_numbers<[1], [0], [0], [1], [0, 0, 1, 1], [], []>} : vector<8x16xf32>, vector<16x64xf32>, vector<8x64xf32> -> vector<8x64xf32>
    %c0_4 = arith.constant 0 : index
    %c0_5 = arith.constant 0 : index
    %c0_6 = arith.constant 0 : index
    %6 = vector.load %arg3[%c0_4, %c0_5, %c0_6] : memref<4x1x64xf32, #tpu.memory_space<vmem>>, vector<1x1x64xf32>
    %7 = vector.shape_cast %6 : vector<1x1x64xf32> to vector<1x64xf32>
    %8 = vector.broadcast %7 : vector<1x64xf32> to vector<8x64xf32>
    %9 = arith.addf %5, %8 : vector<8x64xf32>
    %cst_7 = arith.constant 0.000000e+00 : f32
    %10 = vector.broadcast %cst_7 : f32 to vector<8x64xf32>
    %11 = arith.maximumf %9, %10 : vector<8x64xf32>
    %c0_8 = arith.constant 0 : index
    %c0_9 = arith.constant 0 : index
    %c0_10 = arith.constant 0 : index
    %12 = vector.load %arg4[%c0_8, %c0_9, %c0_10] : memref<4x64x64xf32, #tpu.memory_space<vmem>>, vector<1x64x64xf32>
    %13 = vector.shape_cast %12 : vector<1x64x64xf32> to vector<64x64xf32>
    %cst_11 = arith.constant dense<0.000000e+00> : vector<8x64xf32>
    %14 = tpu.matmul %11, %13, %cst_11 {dimension_numbers = #tpu.dot_dimension_numbers<[1], [0], [0], [1], [0, 0, 1, 1], [], []>} : vector<8x64xf32>, vector<64x64xf32>, vector<8x64xf32> -> vector<8x64xf32>
    %c0_12 = arith.constant 0 : index
    %c0_13 = arith.constant 0 : index
    %c0_14 = arith.constant 0 : index
    %15 = vector.load %arg5[%c0_12, %c0_13, %c0_14] : memref<4x1x64xf32, #tpu.memory_space<vmem>>, vector<1x1x64xf32>
    %16 = vector.shape_cast %15 : vector<1x1x64xf32> to vector<1x64xf32>
    %17 = vector.broadcast %16 : vector<1x64xf32> to vector<8x64xf32>
    %18 = arith.addf %14, %17 : vector<8x64xf32>
    %cst_15 = arith.constant 0.000000e+00 : f32
    %19 = vector.broadcast %cst_15 : f32 to vector<8x64xf32>
    %20 = arith.maximumf %18, %19 : vector<8x64xf32>
    %c0_16 = arith.constant 0 : index
    %c0_17 = arith.constant 0 : index
    %c0_18 = arith.constant 0 : index
    %21 = vector.load %arg6[%c0_16, %c0_17, %c0_18] : memref<4x64x32xf32, #tpu.memory_space<vmem>>, vector<1x64x32xf32>
    %22 = vector.shape_cast %21 : vector<1x64x32xf32> to vector<64x32xf32>
    %cst_19 = arith.constant dense<0.000000e+00> : vector<8x32xf32>
    %23 = tpu.matmul %20, %22, %cst_19 {dimension_numbers = #tpu.dot_dimension_numbers<[1], [0], [0], [1], [0, 0, 1, 1], [], []>} : vector<8x64xf32>, vector<64x32xf32>, vector<8x32xf32> -> vector<8x32xf32>
    %c0_20 = arith.constant 0 : index
    %c0_21 = arith.constant 0 : index
    %c0_22 = arith.constant 0 : index
    %24 = vector.load %arg7[%c0_20, %c0_21, %c0_22] : memref<4x1x32xf32, #tpu.memory_space<vmem>>, vector<1x1x32xf32>
    %25 = vector.shape_cast %24 : vector<1x1x32xf32> to vector<1x32xf32>
    %26 = vector.broadcast %25 : vector<1x32xf32> to vector<8x32xf32>
    %27 = arith.addf %23, %26 : vector<8x32xf32>
    %c0_23 = arith.constant 0 : index
    %c0_24 = arith.constant 0 : index
    %c0_25 = arith.constant 0 : index
    %28 = vector.load %arg8[%c0_23, %c0_24, %c0_25] : memref<4x1x32xf32, #tpu.memory_space<vmem>>, vector<1x1x32xf32>
    %29 = vector.shape_cast %28 : vector<1x1x32xf32> to vector<1x32xf32>
    %cst_26 = arith.constant 3.000000e+00 : f32
    %30 = vector.broadcast %cst_26 : f32 to vector<1x32xf32>
    %31 = arith.mulf %29, %30 : vector<1x32xf32>
    %32 = math.exp %31 : vector<1x32xf32>
    %33 = vector.broadcast %32 : vector<1x32xf32> to vector<8x32xf32>
    %34 = arith.mulf %27, %33 : vector<8x32xf32>
    %35 = vector.extract_strided_slice %34 {offsets = [0, 0], sizes = [8, 16], strides = [1, 1]} : vector<8x32xf32> to vector<8x16xf32>
    %36 = vector.extract_strided_slice %34 {offsets = [0, 16], sizes = [8, 16], strides = [1, 1]} : vector<8x32xf32> to vector<8x16xf32>
    %cst_27 = arith.constant 2.000000e+00 : f32
    %37 = vector.broadcast %cst_27 : f32 to vector<8x16xf32>
    %38 = arith.addf %35, %37 : vector<8x16xf32>
    %39 = arith.negf %38 : vector<8x16xf32>
    %40 = math.exp %39 : vector<8x16xf32>
    %cst_28 = arith.constant 1.000000e+00 : f32
    %41 = vector.broadcast %cst_28 : f32 to vector<8x16xf32>
    %42 = arith.addf %41, %40 : vector<8x16xf32>
    %43 = arith.divf %41, %42 : vector<8x16xf32>
    %44 = arith.addf %2, %36 : vector<8x16xf32>
    %45 = arith.mulf %44, %43 : vector<8x16xf32>
    %46 = tpu.concatenate %1, %45 in 1 : vector<8x16xf32>, vector<8x16xf32> -> vector<8x32xf32>
    %47 = math.log %43 : vector<8x16xf32>
    %cst_29 = arith.constant dense<0.000000e+00> : vector<8xf32>
    %48 = vector.multi_reduction <add>, %47, %cst_29 [1] : vector<8x16xf32> to vector<8xf32>
    %49 = vector.shape_cast %48 : vector<8xf32> to vector<8x1xf32>
    %c0_30 = arith.constant 0 : index
    %c0_31 = arith.constant 0 : index
    %c0_32 = arith.constant 0 : index
    %50 = vector.load %arg9[%c0_30, %c0_31, %c0_32] : memref<3x32x32xf32, #tpu.memory_space<vmem>>, vector<1x32x32xf32>
    %51 = vector.shape_cast %50 : vector<1x32x32xf32> to vector<32x32xf32>
    %cst_33 = arith.constant dense<0.000000e+00> : vector<8x32xf32>
    %52 = tpu.matmul %46, %51, %cst_33 {dimension_numbers = #tpu.dot_dimension_numbers<[1], [0], [0], [1], [0, 0, 1, 1], [], []>} : vector<8x32xf32>, vector<32x32xf32>, vector<8x32xf32> -> vector<8x32xf32>
    %53 = vector.extract_strided_slice %52 {offsets = [0, 0], sizes = [8, 16], strides = [1, 1]} : vector<8x32xf32> to vector<8x16xf32>
    %54 = vector.extract_strided_slice %52 {offsets = [0, 16], sizes = [8, 16], strides = [1, 1]} : vector<8x32xf32> to vector<8x16xf32>
    %c1 = arith.constant 1 : index
    %c0_34 = arith.constant 0 : index
    %c0_35 = arith.constant 0 : index
    %55 = vector.load %arg2[%c1, %c0_34, %c0_35] : memref<4x16x64xf32, #tpu.memory_space<vmem>>, vector<1x16x64xf32>
    %56 = vector.shape_cast %55 : vector<1x16x64xf32> to vector<16x64xf32>
    %cst_36 = arith.constant dense<0.000000e+00> : vector<8x64xf32>
    %57 = tpu.matmul %53, %56, %cst_36 {dimension_numbers = #tpu.dot_dimension_numbers<[1], [0], [0], [1], [0, 0, 1, 1], [], []>} : vector<8x16xf32>, vector<16x64xf32>, vector<8x64xf32> -> vector<8x64xf32>
    %c1_37 = arith.constant 1 : index
    %c0_38 = arith.constant 0 : index
    %c0_39 = arith.constant 0 : index
    %58 = vector.load %arg3[%c1_37, %c0_38, %c0_39] : memref<4x1x64xf32, #tpu.memory_space<vmem>>, vector<1x1x64xf32>
    %59 = vector.shape_cast %58 : vector<1x1x64xf32> to vector<1x64xf32>
    %60 = vector.broadcast %59 : vector<1x64xf32> to vector<8x64xf32>
    %61 = arith.addf %57, %60 : vector<8x64xf32>
    %cst_40 = arith.constant 0.000000e+00 : f32
    %62 = vector.broadcast %cst_40 : f32 to vector<8x64xf32>
    %63 = arith.maximumf %61, %62 : vector<8x64xf32>
    %c1_41 = arith.constant 1 : index
    %c0_42 = arith.constant 0 : index
    %c0_43 = arith.constant 0 : index
    %64 = vector.load %arg4[%c1_41, %c0_42, %c0_43] : memref<4x64x64xf32, #tpu.memory_space<vmem>>, vector<1x64x64xf32>
    %65 = vector.shape_cast %64 : vector<1x64x64xf32> to vector<64x64xf32>
    %cst_44 = arith.constant dense<0.000000e+00> : vector<8x64xf32>
    %66 = tpu.matmul %63, %65, %cst_44 {dimension_numbers = #tpu.dot_dimension_numbers<[1], [0], [0], [1], [0, 0, 1, 1], [], []>} : vector<8x64xf32>, vector<64x64xf32>, vector<8x64xf32> -> vector<8x64xf32>
    %c1_45 = arith.constant 1 : index
    %c0_46 = arith.constant 0 : index
    %c0_47 = arith.constant 0 : index
    %67 = vector.load %arg5[%c1_45, %c0_46, %c0_47] : memref<4x1x64xf32, #tpu.memory_space<vmem>>, vector<1x1x64xf32>
    %68 = vector.shape_cast %67 : vector<1x1x64xf32> to vector<1x64xf32>
    %69 = vector.broadcast %68 : vector<1x64xf32> to vector<8x64xf32>
    %70 = arith.addf %66, %69 : vector<8x64xf32>
    %cst_48 = arith.constant 0.000000e+00 : f32
    %71 = vector.broadcast %cst_48 : f32 to vector<8x64xf32>
    %72 = arith.maximumf %70, %71 : vector<8x64xf32>
    %c1_49 = arith.constant 1 : index
    %c0_50 = arith.constant 0 : index
    %c0_51 = arith.constant 0 : index
    %73 = vector.load %arg6[%c1_49, %c0_50, %c0_51] : memref<4x64x32xf32, #tpu.memory_space<vmem>>, vector<1x64x32xf32>
    %74 = vector.shape_cast %73 : vector<1x64x32xf32> to vector<64x32xf32>
    %cst_52 = arith.constant dense<0.000000e+00> : vector<8x32xf32>
    %75 = tpu.matmul %72, %74, %cst_52 {dimension_numbers = #tpu.dot_dimension_numbers<[1], [0], [0], [1], [0, 0, 1, 1], [], []>} : vector<8x64xf32>, vector<64x32xf32>, vector<8x32xf32> -> vector<8x32xf32>
    %c1_53 = arith.constant 1 : index
    %c0_54 = arith.constant 0 : index
    %c0_55 = arith.constant 0 : index
    %76 = vector.load %arg7[%c1_53, %c0_54, %c0_55] : memref<4x1x32xf32, #tpu.memory_space<vmem>>, vector<1x1x32xf32>
    %77 = vector.shape_cast %76 : vector<1x1x32xf32> to vector<1x32xf32>
    %78 = vector.broadcast %77 : vector<1x32xf32> to vector<8x32xf32>
    %79 = arith.addf %75, %78 : vector<8x32xf32>
    %c1_56 = arith.constant 1 : index
    %c0_57 = arith.constant 0 : index
    %c0_58 = arith.constant 0 : index
    %80 = vector.load %arg8[%c1_56, %c0_57, %c0_58] : memref<4x1x32xf32, #tpu.memory_space<vmem>>, vector<1x1x32xf32>
    %81 = vector.shape_cast %80 : vector<1x1x32xf32> to vector<1x32xf32>
    %cst_59 = arith.constant 3.000000e+00 : f32
    %82 = vector.broadcast %cst_59 : f32 to vector<1x32xf32>
    %83 = arith.mulf %81, %82 : vector<1x32xf32>
    %84 = math.exp %83 : vector<1x32xf32>
    %85 = vector.broadcast %84 : vector<1x32xf32> to vector<8x32xf32>
    %86 = arith.mulf %79, %85 : vector<8x32xf32>
    %87 = vector.extract_strided_slice %86 {offsets = [0, 0], sizes = [8, 16], strides = [1, 1]} : vector<8x32xf32> to vector<8x16xf32>
    %88 = vector.extract_strided_slice %86 {offsets = [0, 16], sizes = [8, 16], strides = [1, 1]} : vector<8x32xf32> to vector<8x16xf32>
    %cst_60 = arith.constant 2.000000e+00 : f32
    %89 = vector.broadcast %cst_60 : f32 to vector<8x16xf32>
    %90 = arith.addf %87, %89 : vector<8x16xf32>
    %91 = arith.negf %90 : vector<8x16xf32>
    %92 = math.exp %91 : vector<8x16xf32>
    %cst_61 = arith.constant 1.000000e+00 : f32
    %93 = vector.broadcast %cst_61 : f32 to vector<8x16xf32>
    %94 = arith.addf %93, %92 : vector<8x16xf32>
    %95 = arith.divf %93, %94 : vector<8x16xf32>
    %96 = arith.addf %54, %88 : vector<8x16xf32>
    %97 = arith.mulf %96, %95 : vector<8x16xf32>
    %98 = tpu.concatenate %53, %97 in 1 : vector<8x16xf32>, vector<8x16xf32> -> vector<8x32xf32>
    %99 = math.log %95 : vector<8x16xf32>
    %cst_62 = arith.constant dense<0.000000e+00> : vector<8xf32>
    %100 = vector.multi_reduction <add>, %99, %cst_62 [1] : vector<8x16xf32> to vector<8xf32>
    %101 = vector.shape_cast %100 : vector<8xf32> to vector<8x1xf32>
    %c1_63 = arith.constant 1 : index
    %c0_64 = arith.constant 0 : index
    %c0_65 = arith.constant 0 : index
    %102 = vector.load %arg9[%c1_63, %c0_64, %c0_65] : memref<3x32x32xf32, #tpu.memory_space<vmem>>, vector<1x32x32xf32>
    %103 = vector.shape_cast %102 : vector<1x32x32xf32> to vector<32x32xf32>
    %cst_66 = arith.constant dense<0.000000e+00> : vector<8x32xf32>
    %104 = tpu.matmul %98, %103, %cst_66 {dimension_numbers = #tpu.dot_dimension_numbers<[1], [0], [0], [1], [0, 0, 1, 1], [], []>} : vector<8x32xf32>, vector<32x32xf32>, vector<8x32xf32> -> vector<8x32xf32>
    %105 = vector.extract_strided_slice %104 {offsets = [0, 0], sizes = [8, 16], strides = [1, 1]} : vector<8x32xf32> to vector<8x16xf32>
    %106 = vector.extract_strided_slice %104 {offsets = [0, 16], sizes = [8, 16], strides = [1, 1]} : vector<8x32xf32> to vector<8x16xf32>
    %c2 = arith.constant 2 : index
    %c0_67 = arith.constant 0 : index
    %c0_68 = arith.constant 0 : index
    %107 = vector.load %arg2[%c2, %c0_67, %c0_68] : memref<4x16x64xf32, #tpu.memory_space<vmem>>, vector<1x16x64xf32>
    %108 = vector.shape_cast %107 : vector<1x16x64xf32> to vector<16x64xf32>
    %cst_69 = arith.constant dense<0.000000e+00> : vector<8x64xf32>
    %109 = tpu.matmul %105, %108, %cst_69 {dimension_numbers = #tpu.dot_dimension_numbers<[1], [0], [0], [1], [0, 0, 1, 1], [], []>} : vector<8x16xf32>, vector<16x64xf32>, vector<8x64xf32> -> vector<8x64xf32>
    %c2_70 = arith.constant 2 : index
    %c0_71 = arith.constant 0 : index
    %c0_72 = arith.constant 0 : index
    %110 = vector.load %arg3[%c2_70, %c0_71, %c0_72] : memref<4x1x64xf32, #tpu.memory_space<vmem>>, vector<1x1x64xf32>
    %111 = vector.shape_cast %110 : vector<1x1x64xf32> to vector<1x64xf32>
    %112 = vector.broadcast %111 : vector<1x64xf32> to vector<8x64xf32>
    %113 = arith.addf %109, %112 : vector<8x64xf32>
    %cst_73 = arith.constant 0.000000e+00 : f32
    %114 = vector.broadcast %cst_73 : f32 to vector<8x64xf32>
    %115 = arith.maximumf %113, %114 : vector<8x64xf32>
    %c2_74 = arith.constant 2 : index
    %c0_75 = arith.constant 0 : index
    %c0_76 = arith.constant 0 : index
    %116 = vector.load %arg4[%c2_74, %c0_75, %c0_76] : memref<4x64x64xf32, #tpu.memory_space<vmem>>, vector<1x64x64xf32>
    %117 = vector.shape_cast %116 : vector<1x64x64xf32> to vector<64x64xf32>
    %cst_77 = arith.constant dense<0.000000e+00> : vector<8x64xf32>
    %118 = tpu.matmul %115, %117, %cst_77 {dimension_numbers = #tpu.dot_dimension_numbers<[1], [0], [0], [1], [0, 0, 1, 1], [], []>} : vector<8x64xf32>, vector<64x64xf32>, vector<8x64xf32> -> vector<8x64xf32>
    %c2_78 = arith.constant 2 : index
    %c0_79 = arith.constant 0 : index
    %c0_80 = arith.constant 0 : index
    %119 = vector.load %arg5[%c2_78, %c0_79, %c0_80] : memref<4x1x64xf32, #tpu.memory_space<vmem>>, vector<1x1x64xf32>
    %120 = vector.shape_cast %119 : vector<1x1x64xf32> to vector<1x64xf32>
    %121 = vector.broadcast %120 : vector<1x64xf32> to vector<8x64xf32>
    %122 = arith.addf %118, %121 : vector<8x64xf32>
    %cst_81 = arith.constant 0.000000e+00 : f32
    %123 = vector.broadcast %cst_81 : f32 to vector<8x64xf32>
    %124 = arith.maximumf %122, %123 : vector<8x64xf32>
    %c2_82 = arith.constant 2 : index
    %c0_83 = arith.constant 0 : index
    %c0_84 = arith.constant 0 : index
    %125 = vector.load %arg6[%c2_82, %c0_83, %c0_84] : memref<4x64x32xf32, #tpu.memory_space<vmem>>, vector<1x64x32xf32>
    %126 = vector.shape_cast %125 : vector<1x64x32xf32> to vector<64x32xf32>
    %cst_85 = arith.constant dense<0.000000e+00> : vector<8x32xf32>
    %127 = tpu.matmul %124, %126, %cst_85 {dimension_numbers = #tpu.dot_dimension_numbers<[1], [0], [0], [1], [0, 0, 1, 1], [], []>} : vector<8x64xf32>, vector<64x32xf32>, vector<8x32xf32> -> vector<8x32xf32>
    %c2_86 = arith.constant 2 : index
    %c0_87 = arith.constant 0 : index
    %c0_88 = arith.constant 0 : index
    %128 = vector.load %arg7[%c2_86, %c0_87, %c0_88] : memref<4x1x32xf32, #tpu.memory_space<vmem>>, vector<1x1x32xf32>
    %129 = vector.shape_cast %128 : vector<1x1x32xf32> to vector<1x32xf32>
    %130 = vector.broadcast %129 : vector<1x32xf32> to vector<8x32xf32>
    %131 = arith.addf %127, %130 : vector<8x32xf32>
    %c2_89 = arith.constant 2 : index
    %c0_90 = arith.constant 0 : index
    %c0_91 = arith.constant 0 : index
    %132 = vector.load %arg8[%c2_89, %c0_90, %c0_91] : memref<4x1x32xf32, #tpu.memory_space<vmem>>, vector<1x1x32xf32>
    %133 = vector.shape_cast %132 : vector<1x1x32xf32> to vector<1x32xf32>
    %cst_92 = arith.constant 3.000000e+00 : f32
    %134 = vector.broadcast %cst_92 : f32 to vector<1x32xf32>
    %135 = arith.mulf %133, %134 : vector<1x32xf32>
    %136 = math.exp %135 : vector<1x32xf32>
    %137 = vector.broadcast %136 : vector<1x32xf32> to vector<8x32xf32>
    %138 = arith.mulf %131, %137 : vector<8x32xf32>
    %139 = vector.extract_strided_slice %138 {offsets = [0, 0], sizes = [8, 16], strides = [1, 1]} : vector<8x32xf32> to vector<8x16xf32>
    %140 = vector.extract_strided_slice %138 {offsets = [0, 16], sizes = [8, 16], strides = [1, 1]} : vector<8x32xf32> to vector<8x16xf32>
    %cst_93 = arith.constant 2.000000e+00 : f32
    %141 = vector.broadcast %cst_93 : f32 to vector<8x16xf32>
    %142 = arith.addf %139, %141 : vector<8x16xf32>
    %143 = arith.negf %142 : vector<8x16xf32>
    %144 = math.exp %143 : vector<8x16xf32>
    %cst_94 = arith.constant 1.000000e+00 : f32
    %145 = vector.broadcast %cst_94 : f32 to vector<8x16xf32>
    %146 = arith.addf %145, %144 : vector<8x16xf32>
    %147 = arith.divf %145, %146 : vector<8x16xf32>
    %148 = arith.addf %106, %140 : vector<8x16xf32>
    %149 = arith.mulf %148, %147 : vector<8x16xf32>
    %150 = tpu.concatenate %105, %149 in 1 : vector<8x16xf32>, vector<8x16xf32> -> vector<8x32xf32>
    %151 = math.log %147 : vector<8x16xf32>
    %cst_95 = arith.constant dense<0.000000e+00> : vector<8xf32>
    %152 = vector.multi_reduction <add>, %151, %cst_95 [1] : vector<8x16xf32> to vector<8xf32>
    %153 = vector.shape_cast %152 : vector<8xf32> to vector<8x1xf32>
    %c2_96 = arith.constant 2 : index
    %c0_97 = arith.constant 0 : index
    %c0_98 = arith.constant 0 : index
    %154 = vector.load %arg9[%c2_96, %c0_97, %c0_98] : memref<3x32x32xf32, #tpu.memory_space<vmem>>, vector<1x32x32xf32>
    %155 = vector.shape_cast %154 : vector<1x32x32xf32> to vector<32x32xf32>
    %cst_99 = arith.constant dense<0.000000e+00> : vector<8x32xf32>
    %156 = tpu.matmul %150, %155, %cst_99 {dimension_numbers = #tpu.dot_dimension_numbers<[1], [0], [0], [1], [0, 0, 1, 1], [], []>} : vector<8x32xf32>, vector<32x32xf32>, vector<8x32xf32> -> vector<8x32xf32>
    %157 = vector.extract_strided_slice %156 {offsets = [0, 0], sizes = [8, 16], strides = [1, 1]} : vector<8x32xf32> to vector<8x16xf32>
    %158 = vector.extract_strided_slice %156 {offsets = [0, 16], sizes = [8, 16], strides = [1, 1]} : vector<8x32xf32> to vector<8x16xf32>
    %c3 = arith.constant 3 : index
    %c0_100 = arith.constant 0 : index
    %c0_101 = arith.constant 0 : index
    %159 = vector.load %arg2[%c3, %c0_100, %c0_101] : memref<4x16x64xf32, #tpu.memory_space<vmem>>, vector<1x16x64xf32>
    %160 = vector.shape_cast %159 : vector<1x16x64xf32> to vector<16x64xf32>
    %cst_102 = arith.constant dense<0.000000e+00> : vector<8x64xf32>
    %161 = tpu.matmul %157, %160, %cst_102 {dimension_numbers = #tpu.dot_dimension_numbers<[1], [0], [0], [1], [0, 0, 1, 1], [], []>} : vector<8x16xf32>, vector<16x64xf32>, vector<8x64xf32> -> vector<8x64xf32>
    %c3_103 = arith.constant 3 : index
    %c0_104 = arith.constant 0 : index
    %c0_105 = arith.constant 0 : index
    %162 = vector.load %arg3[%c3_103, %c0_104, %c0_105] : memref<4x1x64xf32, #tpu.memory_space<vmem>>, vector<1x1x64xf32>
    %163 = vector.shape_cast %162 : vector<1x1x64xf32> to vector<1x64xf32>
    %164 = vector.broadcast %163 : vector<1x64xf32> to vector<8x64xf32>
    %165 = arith.addf %161, %164 : vector<8x64xf32>
    %cst_106 = arith.constant 0.000000e+00 : f32
    %166 = vector.broadcast %cst_106 : f32 to vector<8x64xf32>
    %167 = arith.maximumf %165, %166 : vector<8x64xf32>
    %c3_107 = arith.constant 3 : index
    %c0_108 = arith.constant 0 : index
    %c0_109 = arith.constant 0 : index
    %168 = vector.load %arg4[%c3_107, %c0_108, %c0_109] : memref<4x64x64xf32, #tpu.memory_space<vmem>>, vector<1x64x64xf32>
    %169 = vector.shape_cast %168 : vector<1x64x64xf32> to vector<64x64xf32>
    %cst_110 = arith.constant dense<0.000000e+00> : vector<8x64xf32>
    %170 = tpu.matmul %167, %169, %cst_110 {dimension_numbers = #tpu.dot_dimension_numbers<[1], [0], [0], [1], [0, 0, 1, 1], [], []>} : vector<8x64xf32>, vector<64x64xf32>, vector<8x64xf32> -> vector<8x64xf32>
    %c3_111 = arith.constant 3 : index
    %c0_112 = arith.constant 0 : index
    %c0_113 = arith.constant 0 : index
    %171 = vector.load %arg5[%c3_111, %c0_112, %c0_113] : memref<4x1x64xf32, #tpu.memory_space<vmem>>, vector<1x1x64xf32>
    %172 = vector.shape_cast %171 : vector<1x1x64xf32> to vector<1x64xf32>
    %173 = vector.broadcast %172 : vector<1x64xf32> to vector<8x64xf32>
    %174 = arith.addf %170, %173 : vector<8x64xf32>
    %cst_114 = arith.constant 0.000000e+00 : f32
    %175 = vector.broadcast %cst_114 : f32 to vector<8x64xf32>
    %176 = arith.maximumf %174, %175 : vector<8x64xf32>
    %c3_115 = arith.constant 3 : index
    %c0_116 = arith.constant 0 : index
    %c0_117 = arith.constant 0 : index
    %177 = vector.load %arg6[%c3_115, %c0_116, %c0_117] : memref<4x64x32xf32, #tpu.memory_space<vmem>>, vector<1x64x32xf32>
    %178 = vector.shape_cast %177 : vector<1x64x32xf32> to vector<64x32xf32>
    %cst_118 = arith.constant dense<0.000000e+00> : vector<8x32xf32>
    %179 = tpu.matmul %176, %178, %cst_118 {dimension_numbers = #tpu.dot_dimension_numbers<[1], [0], [0], [1], [0, 0, 1, 1], [], []>} : vector<8x64xf32>, vector<64x32xf32>, vector<8x32xf32> -> vector<8x32xf32>
    %c3_119 = arith.constant 3 : index
    %c0_120 = arith.constant 0 : index
    %c0_121 = arith.constant 0 : index
    %180 = vector.load %arg7[%c3_119, %c0_120, %c0_121] : memref<4x1x32xf32, #tpu.memory_space<vmem>>, vector<1x1x32xf32>
    %181 = vector.shape_cast %180 : vector<1x1x32xf32> to vector<1x32xf32>
    %182 = vector.broadcast %181 : vector<1x32xf32> to vector<8x32xf32>
    %183 = arith.addf %179, %182 : vector<8x32xf32>
    %c3_122 = arith.constant 3 : index
    %c0_123 = arith.constant 0 : index
    %c0_124 = arith.constant 0 : index
    %184 = vector.load %arg8[%c3_122, %c0_123, %c0_124] : memref<4x1x32xf32, #tpu.memory_space<vmem>>, vector<1x1x32xf32>
    %185 = vector.shape_cast %184 : vector<1x1x32xf32> to vector<1x32xf32>
    %cst_125 = arith.constant 3.000000e+00 : f32
    %186 = vector.broadcast %cst_125 : f32 to vector<1x32xf32>
    %187 = arith.mulf %185, %186 : vector<1x32xf32>
    %188 = math.exp %187 : vector<1x32xf32>
    %189 = vector.broadcast %188 : vector<1x32xf32> to vector<8x32xf32>
    %190 = arith.mulf %183, %189 : vector<8x32xf32>
    %191 = vector.extract_strided_slice %190 {offsets = [0, 0], sizes = [8, 16], strides = [1, 1]} : vector<8x32xf32> to vector<8x16xf32>
    %192 = vector.extract_strided_slice %190 {offsets = [0, 16], sizes = [8, 16], strides = [1, 1]} : vector<8x32xf32> to vector<8x16xf32>
    %cst_126 = arith.constant 2.000000e+00 : f32
    %193 = vector.broadcast %cst_126 : f32 to vector<8x16xf32>
    %194 = arith.addf %191, %193 : vector<8x16xf32>
    %195 = arith.negf %194 : vector<8x16xf32>
    %196 = math.exp %195 : vector<8x16xf32>
    %cst_127 = arith.constant 1.000000e+00 : f32
    %197 = vector.broadcast %cst_127 : f32 to vector<8x16xf32>
    %198 = arith.addf %197, %196 : vector<8x16xf32>
    %199 = arith.divf %197, %198 : vector<8x16xf32>
    %200 = arith.addf %158, %192 : vector<8x16xf32>
    %201 = arith.mulf %200, %199 : vector<8x16xf32>
    %202 = tpu.concatenate %157, %201 in 1 : vector<8x16xf32>, vector<8x16xf32> -> vector<8x32xf32>
    %203 = math.log %199 : vector<8x16xf32>
    %cst_128 = arith.constant dense<0.000000e+00> : vector<8xf32>
    %204 = vector.multi_reduction <add>, %203, %cst_128 [1] : vector<8x16xf32> to vector<8xf32>
    %205 = vector.shape_cast %204 : vector<8xf32> to vector<8x1xf32>
    %c0_129 = arith.constant 0 : index
    %c0_130 = arith.constant 0 : index
    %206 = vector.load %arg10[%c0_129, %c0_130] : memref<8x32xf32, #tpu.memory_space<vmem>>, vector<8x32xf32>
    tpu.vector_store %arg10[%c0_129, %c0_130], %202 {strides = array<i32>} : memref<8x32xf32, #tpu.memory_space<vmem>>, vector<8x32xf32>,
    %207 = tpu.concatenate %49, %101, %153, %205 in 1 : vector<8x1xf32>, vector<8x1xf32>, vector<8x1xf32>, vector<8x1xf32> -> vector<8x4xf32>
    %c0_131 = arith.constant 0 : index
    %c0_132 = arith.constant 0 : index
    %208 = vector.load %arg11[%c0_131, %c0_132] : memref<8x4xf32, #tpu.memory_space<vmem>>, vector<8x4xf32>
    tpu.vector_store %arg11[%c0_131, %c0_132], %207 {strides = array<i32>} : memref<8x4xf32, #tpu.memory_space<vmem>>, vector<8x4xf32>,
    return
  }
  func.func @transform_0(%arg0: i32) -> (i32, i32) {
    %c0_i32 = arith.constant 0 : i32
    %c0_i32_0 = arith.constant 0 : i32
    return %arg0, %c0_i32 : i32, i32
  }
  func.func @transform_1(%arg0: i32) -> (i32, i32, i32) {
    %c0_i32 = arith.constant 0 : i32
    %c0_i32_0 = arith.constant 0 : i32
    %c0_i32_1 = arith.constant 0 : i32
    %c0_i32_2 = arith.constant 0 : i32
    return %c0_i32, %c0_i32_0, %c0_i32_1 : i32, i32, i32
  }
  func.func @transform_2(%arg0: i32) -> (i32, i32, i32) {
    %c0_i32 = arith.constant 0 : i32
    %c0_i32_0 = arith.constant 0 : i32
    %c0_i32_1 = arith.constant 0 : i32
    %c0_i32_2 = arith.constant 0 : i32
    return %c0_i32, %c0_i32_0, %c0_i32_1 : i32, i32, i32
  }
  func.func @transform_3(%arg0: i32) -> (i32, i32, i32) {
    %c0_i32 = arith.constant 0 : i32
    %c0_i32_0 = arith.constant 0 : i32
    %c0_i32_1 = arith.constant 0 : i32
    %c0_i32_2 = arith.constant 0 : i32
    return %c0_i32, %c0_i32_0, %c0_i32_1 : i32, i32, i32
  }
  func.func @transform_4(%arg0: i32) -> (i32, i32, i32) {
    %c0_i32 = arith.constant 0 : i32
    %c0_i32_0 = arith.constant 0 : i32
    %c0_i32_1 = arith.constant 0 : i32
    %c0_i32_2 = arith.constant 0 : i32
    return %c0_i32, %c0_i32_0, %c0_i32_1 : i32, i32, i32
  }
  func.func @transform_5(%arg0: i32) -> (i32, i32, i32) {
    %c0_i32 = arith.constant 0 : i32
    %c0_i32_0 = arith.constant 0 : i32
    %c0_i32_1 = arith.constant 0 : i32
    %c0_i32_2 = arith.constant 0 : i32
    return %c0_i32, %c0_i32_0, %c0_i32_1 : i32, i32, i32
  }
  func.func @transform_6(%arg0: i32) -> (i32, i32, i32) {
    %c0_i32 = arith.constant 0 : i32
    %c0_i32_0 = arith.constant 0 : i32
    %c0_i32_1 = arith.constant 0 : i32
    %c0_i32_2 = arith.constant 0 : i32
    return %c0_i32, %c0_i32_0, %c0_i32_1 : i32, i32, i32
  }
  func.func @transform_7(%arg0: i32) -> (i32, i32, i32) {
    %c0_i32 = arith.constant 0 : i32
    %c0_i32_0 = arith.constant 0 : i32
    %c0_i32_1 = arith.constant 0 : i32
    %c0_i32_2 = arith.constant 0 : i32
    return %c0_i32, %c0_i32_0, %c0_i32_1 : i32, i32, i32
  }
  func.func @transform_8(%arg0: i32) -> (i32, i32, i32) {
    %c0_i32 = arith.constant 0 : i32
    %c0_i32_0 = arith.constant 0 : i32
    %c0_i32_1 = arith.constant 0 : i32
    %c0_i32_2 = arith.constant 0 : i32
    return %c0_i32, %c0_i32_0, %c0_i32_1 : i32, i32, i32
  }
  func.func @transform_9(%arg0: i32) -> (i32, i32) {
    %c0_i32 = arith.constant 0 : i32
    %c0_i32_0 = arith.constant 0 : i32
    return %arg0, %c0_i32 : i32, i32
  }
  func.func @transform_10(%arg0: i32) -> (i32, i32) {
    %c0_i32 = arith.constant 0 : i32
    %c0_i32_0 = arith.constant 0 : i32
    return %arg0, %c0_i32 : i32, i32
  }
}

</mosaic_0001>

<bundles_post_ra>
// kernel: flownet_forward.1
= control target key start
LH: loop header
LB: loop body
LE: loop exit
PB: predicated region body
PF: predicated region fallthrough
CT: control target
= control target key end

     0   :  { %16 = vsyncpa [#allocation3], 0  ;;  %s2619_s0 = inlined_call_operand.vmem [shape: f32[8,32], index: 0, kind: input, shape index: {}]   ;;  %s2620_s1 = inlined_call_operand.hbm [shape: f32[4,16,64], index: 1, kind: input, shape index: {}]   ;;  %s2621_s2 = inlined_call_operand.vmem [shape: f32[4,1,64], index: 2, kind: input, shape index: {}]   ;;  %s2622_s3 = inlined_call_operand.vmem [shape: f32[4,64,64], index: 3, kind: input, shape index: {}]   ;;  %s2623_s4 = inlined_call_operand.vmem [shape: f32[4,1,64], index: 4, kind: input, shape index: {}]   ;;  %s2624_s5 = inlined_call_operand.vmem [shape: f32[4,64,32], index: 5, kind: input, shape index: {}]   ;;  %s2625_s6 = inlined_call_operand.vmem [shape: f32[4,1,32], index: 6, kind: input, shape index: {}]   ;;  %s2626_s7 = inlined_call_operand.vmem [shape: f32[4,1,32], index: 7, kind: input, shape index: {}]   ;;  %s2627_s8 = inlined_call_operand.vmem [shape: f32[3,32,32], index: 8, kind: input, shape index: {}]   ;;  %s2628_s9 = inlined_call_operand.hbm [shape: f32[8,32], index: 9, kind: output, shape index: {0}]   ;;  %s2629_s10 = inlined_call_operand.vmem [shape: f32[8,4], index: 10, kind: output, shape index: {1}]  }
   0x1   :  { %17 = vsyncpa [#allocation4], 0  ;;  %s2120_s13 = smov [#allocation2]   ;;  %s2072_s17 = scalar_lea.hbm %s2620_s1, 1024 }
   0x2   :  { %s25_s14 = sshll.u32 %s2120_s13, 4  ;;  %p2073_p0 = scmp.ne.s32.totalorder %s2620_s1, %s2072_s17  ;;  %s26_s14 = int_to_ptr.vmem [resolvable:$true] %s25_s14 }
   0x3   :  { %p2076_p1 = scmp.lt.u32.totalorder %s2072_s17, %s2620_s1 }
   0x5   :  { %p2078_p2 = pnand %p2076_p1, %p2073_p0 }
   0x7   :  { %2081 = shalt.err (!%p2078_p2)
}
   0x8   :  { %s2082_s22 = scalar_lea.vmem %s26_s14, 1024  ;;  %p2087_p4 = scmp.lt.s32.totalorder %s26_s14, %s26_s14 }
   0x9   :  { %p2083_p3 = scmp.ne.s32.totalorder %s26_s14, %s2082_s22  ;;  %p2088_p5 = scmp.lt.s32.totalorder %s2082_s22, %s2082_s22 }
   0xb   :  { %p2089_p6 = por %p2088_p5, %p2087_p4 }
   0xd   :  { %p2090_p7 = pnand %p2089_p6, %p2083_p3 }
   0xf   :  { %2093 = shalt.err (!%p2090_p7)
}
  0x10   :  { %s2121_s23 = smov 128   ;;  %s2122_s24 = smov 8  }
  0x11   :  { %31 = dma.hbm_to_vmem [thread:$0]  %s2620_s1, 1024, %s26_s14, [#allocation3], %s2121_s23, %s2121_s23, %s2122_s24  }
  0x12   :  { %2116 = dma.done.wait [#allocation3], 1024  }
  0x13   :  { %2117 = vsyncadd [#allocation3], 4294966272  ;;  %v2123_v0 = vmov 0.0|0.0   ;;  %vm2124_vm0 = vmmov 0   ;;  %v2125_v1 = vmov 0.0   ;;  %v50_v2 = vld [vmem:[#allocation2] sm:$0xff]  ;;  %v317_v46 = vlaneseq }
  0x14   :  { %1906 = vmatprep.subr.bf16.mxu0 %v2123_v0  ;;  %1697 = vmatprep.mubr.msk.f32.mxu0 %vm2124_vm0, %v2125_v1  ;;  %v51_v3 = vld [vmem:[#allocation2 + $0x8] sm:$0xff]  ;;  %v134_v5 = vld [vmem:[%s2622_s3] sm:$0xff]  ;;  %v136_v7 = vld [vmem:[%s2622_s3 + $0x10] sm:$0xff]  ;;  %vm59_vm1 = vcmask 130048   ;;  %vm149_vm2 = vcmask 523264   ;;  %s2126_s12 = smov 16  }
  0x15   :  { %1909 = vmatprep.subr.bf16.mxu1 %v2123_v0  ;;  %1716 = vmatprep.mubr.msk.f32.mxu1 %vm2124_vm0, %v2125_v1  ;;  %v1907_v4 = vpack.c.bf16 %v51_v3, %v50_v2  ;;  %v135_v6 = vld [vmem:[%s2622_s3 + $0x8] sm:$0xff]  ;;  %v137_v9 = vld [vmem:[%s2622_s3 + $0x18] sm:$0xff]  ;;  %v2216_v10 = vld [vmem:[%s2619_s0] sm:$0xff]  ;;  %v318_v47 = vshrl.u32 %v317_v46, 7  ;;  %vm346_vm3 = vcmask 261120  }
  0x16   :  { %v1910_v8 = vpack.c.bf16 %v135_v6, %v134_v5  ;;  %v1913_v11 = vpack.c.bf16 %v137_v9, %v136_v7  ;;  %v138_v12 = vld [vmem:[%s2622_s3 + $0x20] sm:$0xff]  ;;  %v139_v13 = vld [vmem:[%s2622_s3 + $0x28] sm:$0xff]  ;;  %v140_v15 = vld [vmem:[%s2622_s3 + $0x30] sm:$0xff] }
  0x17   :  { %1908 = vmatpush3.bf16.msra.mxu0 %v1907_v4  ;;  %v1916_v14 = vpack.c.bf16 %v139_v13, %v138_v12  ;;  %v141_v16 = vld [vmem:[%s2622_s3 + $0x38] sm:$0xff]  ;;  %v224_v18 = vld [vmem:[%s2624_s5] sm:$0xff]  ;;  %v225_v19 = vld [vmem:[%s2624_s5 + $0x8] sm:$0xff]  ;;  %v2289_v48 = vsub.s32 0, %v318_v47 }
  0x18   :  { %1911 = vmatpush3.bf16.msra.mxu1 %v1910_v8  ;;  %1921 = vmatprep.subr.bf16.mxu0 %v2123_v0  ;;  %v1919_v17 = vpack.c.bf16 %v141_v16, %v140_v15  ;;  %v226_v20 = vld [vmem:[%s2624_s5 + $0x10] sm:$0xff]  ;;  %v1922_v21 = vpack.c.bf16 %v225_v19, %v224_v18  ;;  %v227_v22 = vld [vmem:[%s2624_s5 + $0x18] sm:$0xff]  ;;  %v228_v24 = vld [vmem:[%s2624_s5 + $0x20] sm:$0xff] }
  0x19   :  { %1912 = vmatprep.subr.bf16.mxu1 %v2123_v0  ;;  %v1925_v23 = vpack.c.bf16 %v227_v22, %v226_v20  ;;  %v229_v25 = vld [vmem:[%s2624_s5 + $0x28] sm:$0xff]  ;;  %v1495_v27 = vld [vmem:[%s2621_s2] ss:$0 sm:$0xff]  ;;  %v230_v32 = vld [vmem:[%s2624_s5 + $0x30] sm:$0xff] }
  0x1a   :  { %1698 = vmatmul.mubr.msk.f32.vlgmr.msra.gmra.mrb[0].mxu0 %vm59_vm1, %v2216_v10  ;;  %v1928_v26 = vpack.c.bf16 %v229_v25, %v228_v24  ;;  %v231_v33 = vld [vmem:[%s2624_s5 + $0x38] sm:$0xff]  ;;  %v1497_v35 = vld [vmem:[%s2623_s4] ss:$0 sm:$0xff]  ;;  %v343_v41 = vld [vmem:[%s2627_s8 + $0x8] sm:$0xff] }
  0x1b   :  { %1735 = vmatprep.mubr.msk.f32.mxu0 %vm2124_vm0, %v2125_v1  ;;  %1923 = vmatpush3.bf16.msra.mxu0 %v1922_v21  ;;  %v1931_v34 = vpack.c.bf16 %v231_v33, %v230_v32  ;;  %v342_v40 = vld [vmem:[%s2627_s8] sm:$0xff]  ;;  %v344_v58 = vld [vmem:[%s2627_s8 + $0x10] sm:$0xff]  ;;  %v345_v59 = vld [vmem:[%s2627_s8 + $0x18] sm:$0xff] }
  0x1c   :  { %1914 = vmatpush3.bf16.msra.mxu1 %v1913_v11  ;;  %1924 = vmatprep.subr.bf16.mxu0 %v2123_v0  ;;  %v1934_v42 = vpack.c.bf16 %v343_v41, %v342_v40  ;;  %v312_v43 = vld [vmem:[%s2626_s7] sm:$0x1]  ;;  %v1937_v60 = vpack.c.bf16 %v345_v59, %v344_v58  ;;  %v421_v63 = vld [vmem:[#allocation2 + $0x10] sm:$0xff]  ;;  %v422_v2 = vld [vmem:[#allocation2 + $0x18] sm:$0xff] }
  0x1d   :  { %1915 = vmatprep.subr.bf16.mxu1 %v2123_v0  ;;  %v313_v44 = vmul.f32 3.0, %v312_v43  ;;  %v1499_v50 = vld [vmem:[%s2625_s6] ss:$0 sm:$0xff]  ;;  %v1940_v3 = vpack.c.bf16 %v422_v2, %v421_v63  ;;  %v1507_v11 = vld [vmem:[%s2622_s3 + $0x48] sm:$0xff]  ;;  %v1508_v13 = vld [vmem:[%s2622_s3 + $0x50] sm:$0xff] }
  0x1e   :  { %v1506_v9 = vld [vmem:[%s2622_s3 + $0x40] sm:$0xff]  ;;  %v1511_v18 = vld [vmem:[%s2622_s3 + $0x68] sm:$0xff]  ;;  %v1512_v20 = vld [vmem:[%s2622_s3 + $0x70] sm:$0xff] }
  0x1f   :  { %1926 = vmatpush3.bf16.msra.mxu0 %v1925_v23  ;;  %v314_v45 = vmul.f32 1.442695, %v313_v44  ;;  %v1943_v12 = vpack.c.bf16 %v1507_v11, %v1506_v9  ;;  %v1513_v21 = vld [vmem:[%s2622_s3 + $0x78] sm:$0xff]  ;;  %v1517_v23 = vld [vmem:[%s2624_s5 + $0x40] sm:$0xff]  ;;  %v1518_v24 = vld [vmem:[%s2624_s5 + $0x48] sm:$0xff] }
  0x20   :  { %1917 = vmatpush3.bf16.msra.mxu1 %v1916_v14  ;;  %1927 = vmatprep.subr.bf16.mxu0 %v2123_v0  ;;  %v1952_v22 = vpack.c.bf16 %v1513_v21, %v1512_v20  ;;  %v1519_v25 = vld [vmem:[%s2624_s5 + $0x50] sm:$0xff]  ;;  %v1504_v32 = vld [vmem:[%s2621_s2 + $0x1] ss:$0 sm:$0xff]  ;;  %v1531_v46 = vld [vmem:[%s2627_s8 + $0x28] sm:$0xff] }
  0x21   :  { %1918 = vmatprep.subr.bf16.mxu1 %v2123_v0  ;;  %2040 = vpow2.f32 %v314_v45  ;;  %v1515_v40 = vld [vmem:[%s2623_s4 + $0x1] ss:$0 sm:$0xff]  ;;  %v1533_v63 = vld [vmem:[%s2627_s8 + $0x38] sm:$0xff]  ;;  %v1540_v20 = vld [vmem:[%s2622_s3 + $0x90] sm:$0xff] }
  0x22   :  { %v1530_v45 = vld [vmem:[%s2627_s8 + $0x20] sm:$0xff] }
  0x23   :  { %1929 = vmatpush3.bf16.msra.mxu0 %v1928_v26  ;;  %v1955_v26 = vpack.c.bf16 %v1518_v24, %v1517_v23  ;;  %v1967_v47 = vpack.c.bf16 %v1531_v46, %v1530_v45  ;;  %v796_v11 = vld [vmem:[#allocation2 + $0x20] sm:$0xff]  ;;  %v1556_v45 = vld [vmem:[%s2624_s5 + $0xb8] sm:$0xff] }
  0x24   :  { %1920 = vmatpush3.bf16.msra.mxu1 %v1919_v17  ;;  %1930 = vmatprep.subr.bf16.mxu0 %v2123_v0  ;;  %v1510_v17 = vld [vmem:[%s2622_s3 + $0x60] sm:$0xff] }
  0x25   :  { %1933 = vmatprep.subr.bf16.mxu1 %v2123_v0  ;;  %v1949_v19 = vpack.c.bf16 %v1511_v18, %v1510_v17  ;;  %v1538_v17 = vld [vmem:[%s2622_s3 + $0x80] sm:$0xff]  ;;  %v1539_v18 = vld [vmem:[%s2622_s3 + $0x88] sm:$0xff] }
  0x26   :  { %v1542_v24 = vld [vmem:[%s2622_s3 + $0xa0] sm:$0xff] }
  0x27   :  { %1932 = vmatpush3.bf16.msra.mxu0 %v1931_v34 }
  0x28   :  { %1939 = vmatprep.subr.bf16.mxu0 %v2123_v0 }
  0x2b   :  { %v2041_v49 = vpop.eup %2040 }
  0x2c   :  { %v320_v51 = vrot.slane %v2041_v49, %v2289_v48  ;;  %v1528_v49 = vld [vmem:[%s2626_s7 + $0x1] sm:$0x1] }
  0xed   :  { %v129_v28 = vpop.f32.mrb[0].mxu0 }
  0xee   :  { %v130_v29 = vadd.f32 %v1495_v27, %v129_v28  ;;  %v1699_v30 = vpop.f32.mrb[1].mxu0  ;;  %v1520_v27 = vld [vmem:[%s2624_s5 + $0x58] sm:$0xff] }
  0xef   :  { %v1958_v28 = vpack.c.bf16 %v1520_v27, %v1519_v25  ;;  %v1522_v30 = vld [vmem:[%s2624_s5 + $0x68] sm:$0xff]  ;;  %v1544_v27 = vld [vmem:[%s2622_s3 + $0xb0] sm:$0xff] }
  0xf0   :  { %v133_v31 = vmax.f32 %v130_v29, 0.0  ;;  %v1521_v29 = vld [vmem:[%s2624_s5 + $0x60] sm:$0xff]  ;;  %v1543_v25 = vld [vmem:[%s2622_s3 + $0xa8] sm:$0xff] }
  0xf2   :  { %1717 = vmatmul.mubr.msk.f32.vlgmr.msra.gmra.mrb[0].mxu1 %vm149_vm2, %v133_v31  ;;  %v1961_v31 = vpack.c.bf16 %v1522_v30, %v1521_v29  ;;  %v1549_v30 = vld [vmem:[%s2624_s5 + $0x80] sm:$0xff] }
  0xf3   :  { %1746 = vmatprep.mubr.msk.f32.mxu1 %vm2124_vm0, %v2125_v1  ;;  %1935 = vmatpush3.bf16.msra.mxu1 %v1934_v42 }
  0xf4   :  { %1936 = vmatprep.subr.bf16.mxu1 %v2123_v0 }
  0xf7   :  { %1938 = vmatpush3.bf16.msra.mxu1 %v1937_v60 }
  0xf8   :  { %1954 = vmatprep.subr.bf16.mxu1 %v2123_v0 }
 0x1c5   :  { %v219_v36 = vpop.f32.mrb[0].mxu1 }
 0x1c6   :  { %v220_v37 = vadd.f32 %v1497_v35, %v219_v36  ;;  %v1718_v38 = vpop.f32.mrb[1].mxu1 }
 0x1c7   :  { %v1524_v38 = vld [vmem:[%s2624_s5 + $0x78] sm:$0xff] }
 0x1c8   :  { %v223_v39 = vmax.f32 %v220_v37, 0.0  ;;  %v1523_v37 = vld [vmem:[%s2624_s5 + $0x70] sm:$0xff] }
 0x1ca   :  { %1736 = vmatmul.mubr.msk.f32.vlgmr.msra.gmra.mrb[2].mxu0 %vm149_vm2, %v223_v39  ;;  %v1964_v39 = vpack.c.bf16 %v1524_v38, %v1523_v37  ;;  %v1554_v37 = vld [vmem:[%s2624_s5 + $0xa8] sm:$0xff] }
 0x1cb   :  { %1753 = vmatprep.mubr.msk.f32.mxu0 %vm2124_vm0, %v2125_v1  ;;  %1941 = vmatpush3.bf16.msra.mxu0 %v1940_v3 }
 0x1cc   :  { %1942 = vmatprep.subr.bf16.mxu0 %v2123_v0 }
 0x29d   :  { %v308_v52 = vpop.f32.mrb[2].mxu0 }
 0x29e   :  { %v309_v53 = vadd.f32 %v1499_v50, %v308_v52  ;;  %v1737_v54 = vpop.f32.mrb[3].mxu0  ;;  %v688_v50 = vmul.f32 3.0, %v1528_v49 }
 0x2a0   :  { %v322_v55 = vmul.f32 %v320_v51, %v309_v53  ;;  %v689_v51 = vmul.f32 1.442695, %v688_v50  ;;  %v1526_v53 = vld [vmem:[%s2625_s6 + $0x1] ss:$0 sm:$0xff] }
 0x2a2   :  { %v323_v56 = vadd.f32 2.0, %v322_v55  ;;  %v330_v5 = vadd.f32 %v322_v55, %v2216_v10 }
 0x2a4   :  { %v1501_v57 = vmul.f32 -1.442695, %v323_v56 }
 0x2a6   :  { %2042 = vpow2.f32 %v1501_v57 }
 0x2b0   :  { %v2043_v61 = vpop.eup %2042 }
 0x2b1   :  { %v327_v62 = vadd.f32 1.0, %v2043_v61 }
 0x2b3   :  { %2044 = vrcp.f32 %v327_v62  ;;  %v1532_v62 = vld [vmem:[%s2627_s8 + $0x30] sm:$0xff] }
 0x2b4   :  { %2046 = vpow2.f32 %v689_v51  ;;  %v1970_v2 = vpack.c.bf16 %v1533_v63, %v1532_v62 }
 0x2bd   :  { %v2303_v4 = vpop.eup %2044 }
 0x2be   :  { %332 = vrot.lane.b32.xlu0 %v2303_v4, %s2126_s12  ;;  %v2047_v52 = vpop.eup %2046 }
 0x2bf   :  { %v695_v54 = vrot.slane %v2047_v52, %v2289_v48 }
 0x330   :  { %v333_v6 = vpop.permute.xlu0 %332 }
 0x331   :  { %v335_v7 = vmul.f32 %v333_v6, %v330_v5 }
 0x333   :  { %v336_v8 = vsel %vm59_vm1, %v2216_v10, %v335_v7  ;;  %v1509_v10 = vld [vmem:[%s2622_s3 + $0x58] sm:$0xff] }
 0x334   :  { %1747 = vmatmul.mubr.msk.f32.vlgmr.msra.gmra.mrb[2].mxu1 %vm346_vm3, %v336_v8  ;;  %v1946_v16 = vpack.c.bf16 %v1509_v10, %v1508_v13 }
 0x335   :  { %1791 = vmatprep.mubr.msk.f32.mxu1 %vm2124_vm0, %v2125_v1  ;;  %1956 = vmatpush3.bf16.msra.mxu1 %v1955_v26  ;;  %v1982_v26 = vpack.c.bf16 %v1543_v25, %v1542_v24 }
 0x336   :  { %1957 = vmatprep.subr.bf16.mxu1 %v2123_v0 }
 0x339   :  { %1959 = vmatpush3.bf16.msra.mxu1 %v1958_v28  ;;  %v1545_v28 = vld [vmem:[%s2622_s3 + $0xb8] sm:$0xff] }
 0x33a   :  { %1960 = vmatprep.subr.bf16.mxu1 %v2123_v0  ;;  %v1985_v29 = vpack.c.bf16 %v1545_v28, %v1544_v27  ;;  %v1571_v27 = vld [vmem:[%s2622_s3 + $0xc8] sm:$0xff] }
 0x33d   :  { %1962 = vmatpush3.bf16.msra.mxu1 %v1961_v31  ;;  %v1550_v31 = vld [vmem:[%s2624_s5 + $0x88] sm:$0xff] }
 0x33e   :  { %1963 = vmatprep.subr.bf16.mxu1 %v2123_v0 }
 0x341   :  { %1965 = vmatpush3.bf16.msra.mxu1 %v1964_v39  ;;  %v1536_v39 = vld [vmem:[%s2621_s2 + $0x2] ss:$0 sm:$0xff] }
 0x342   :  { %1972 = vmatprep.subr.bf16.mxu1 %v2123_v0 }
 0x407   :  { %v2325_v14 = vpop.f32.mrb[2].mxu1 }
 0x408   :  { %v1748_v15 = vpop.f32.mrb[3].mxu1  ;;  %1754 = vmatmul.mubr.msk.f32.vlgmr.msra.gmra.mrb[4].mxu0 %vm59_vm1, %v2325_v14 }
 0x409   :  { %1944 = vmatpush3.bf16.msra.mxu0 %v1943_v12  ;;  %1772 = vmatprep.mubr.msk.f32.mxu0 %vm2124_vm0, %v2125_v1  ;;  %v797_v12 = vld [vmem:[#allocation2 + $0x28] sm:$0xff] }
 0x40a   :  { %1945 = vmatprep.subr.bf16.mxu0 %v2123_v0  ;;  %v1973_v13 = vpack.c.bf16 %v797_v12, %v796_v11 }
 0x40d   :  { %1947 = vmatpush3.bf16.msra.mxu0 %v1946_v16 }
 0x40e   :  { %1948 = vmatprep.subr.bf16.mxu0 %v2123_v0 }
 0x411   :  { %1950 = vmatpush3.bf16.msra.mxu0 %v1949_v19  ;;  %v1976_v19 = vpack.c.bf16 %v1539_v18, %v1538_v17 }
 0x412   :  { %1951 = vmatprep.subr.bf16.mxu0 %v2123_v0 }
 0x415   :  { %1953 = vmatpush3.bf16.msra.mxu0 %v1952_v22 }
 0x416   :  { %1966 = vmatprep.subr.bf16.mxu0 %v2123_v0 }
 0x4db   :  { %v500_v33 = vpop.f32.mrb[4].mxu0 }
 0x4dc   :  { %v501_v34 = vadd.f32 %v1504_v32, %v500_v33  ;;  %v1755_v35 = vpop.f32.mrb[5].mxu0  ;;  %v1551_v32 = vld [vmem:[%s2624_s5 + $0x90] sm:$0xff]  ;;  %v1988_v33 = vpack.c.bf16 %v1550_v31, %v1549_v30 }
 0x4de   :  { %v504_v36 = vmax.f32 %v501_v34, 0.0  ;;  %v1552_v34 = vld [vmem:[%s2624_s5 + $0x98] sm:$0xff] }
 0x4df   :  { %v1991_v35 = vpack.c.bf16 %v1552_v34, %v1551_v32  ;;  %v1575_v34 = vld [vmem:[%s2622_s3 + $0xe8] sm:$0xff] }
 0x4e0   :  { %1773 = vmatmul.mubr.msk.f32.vlgmr.msra.gmra.mrb[6].mxu0 %vm149_vm2, %v504_v36  ;;  %v1553_v36 = vld [vmem:[%s2624_s5 + $0xa0] sm:$0xff] }
 0x4e1   :  { %1802 = vmatprep.mubr.msk.f32.mxu0 %vm2124_vm0, %v2125_v1  ;;  %1968 = vmatpush3.bf16.msra.mxu0 %v1967_v47  ;;  %v1994_v38 = vpack.c.bf16 %v1554_v37, %v1553_v36  ;;  %v1547_v47 = vld [vmem:[%s2623_s4 + $0x2] ss:$0 sm:$0xff]  ;;  %v1577_v36 = vld [vmem:[%s2622_s3 + $0xf8] sm:$0xff] }
 0x4e2   :  { %1969 = vmatprep.subr.bf16.mxu0 %v2123_v0 }
 0x4e5   :  { %1971 = vmatpush3.bf16.msra.mxu0 %v1970_v2 }
 0x4e6   :  { %1987 = vmatprep.subr.bf16.mxu0 %v2123_v0 }
 0x5b3   :  { %v591_v41 = vpop.f32.mrb[6].mxu0 }
 0x5b4   :  { %v592_v42 = vadd.f32 %v1515_v40, %v591_v41  ;;  %v1774_v43 = vpop.f32.mrb[7].mxu0 }
 0x5b6   :  { %v595_v44 = vmax.f32 %v592_v42, 0.0 }
 0x5b8   :  { %1792 = vmatmul.mubr.msk.f32.vlgmr.msra.gmra.mrb[4].mxu1 %vm149_vm2, %v595_v44  ;;  %v1555_v44 = vld [vmem:[%s2624_s5 + $0xb0] sm:$0xff] }
 0x5b9   :  { %1809 = vmatprep.mubr.msk.f32.mxu1 %vm2124_vm0, %v2125_v1  ;;  %1974 = vmatpush3.bf16.msra.mxu1 %v1973_v13  ;;  %v1997_v46 = vpack.c.bf16 %v1556_v45, %v1555_v44  ;;  %v1585_v44 = vld [vmem:[%s2624_s5 + $0xe0] sm:$0xff]  ;;  %v1586_v45 = vld [vmem:[%s2624_s5 + $0xe8] sm:$0xff] }
 0x5ba   :  { %1975 = vmatprep.subr.bf16.mxu1 %v2123_v0 }
 0x68b   :  { %v682_v55 = vpop.f32.mrb[4].mxu1 }
 0x68c   :  { %v683_v56 = vadd.f32 %v1526_v53, %v682_v55  ;;  %v1793_v57 = vpop.f32.mrb[5].mxu1  ;;  %v1562_v53 = vld [vmem:[%s2627_s8 + $0x40] sm:$0xff] }
 0x68e   :  { %v697_v58 = vmul.f32 %v695_v54, %v683_v56  ;;  %v1563_v54 = vld [vmem:[%s2627_s8 + $0x48] sm:$0xff]  ;;  %v1560_v56 = vld [vmem:[%s2626_s7 + $0x2] sm:$0x1] }
 0x68f   :  { %v2000_v55 = vpack.c.bf16 %v1563_v54, %v1562_v53  ;;  %v1063_v57 = vmul.f32 3.0, %v1560_v56  ;;  %v1587_v53 = vld [vmem:[%s2624_s5 + $0xf0] sm:$0xff]  ;;  %v1588_v54 = vld [vmem:[%s2624_s5 + $0xf8] sm:$0xff] }
 0x690   :  { %v698_v59 = vadd.f32 2.0, %v697_v58  ;;  %v705_v60 = vadd.f32 %v697_v58, %v2325_v14 }
 0x691   :  { %v1064_v58 = vmul.f32 1.442695, %v1063_v57 }
 0x692   :  { %v1529_v61 = vmul.f32 -1.442695, %v698_v59 }
 0x694   :  { %2048 = vpow2.f32 %v1529_v61 }
 0x69e   :  { %v2049_v3 = vpop.eup %2048 }
 0x69f   :  { %v702_v5 = vadd.f32 1.0, %v2049_v3 }
 0x6a1   :  { %2050 = vrcp.f32 %v702_v5 }
 0x6ab   :  { %v2051_v6 = vpop.eup %2050 }
 0x6ac   :  { %707 = vrot.lane.b32.xlu0 %v2051_v6, %s2126_s12  ;;  %2052 = vlog2.f32 %v2051_v6 }
 0x6ad   :  { %2054 = vpow2.f32 %v1064_v58 }
 0x6b6   :  { %v2053_v7 = vpop.eup %2052 }
 0x6b7   :  { %v713_v8 = vmul.f32 0.6931472, %v2053_v7  ;;  %v2055_v59 = vpop.eup %2054 }
 0x6b8   :  { %v1070_v61 = vrot.slane %v2055_v59, %v2289_v48 }
 0x6b9   :  { %v714_v9 = vsel %vm59_vm1, %v713_v8, 0.0  ;;  %v1564_v8 = vld [vmem:[%s2627_s8 + $0x50] sm:$0xff] }
 0x6cb   :  { %715 = vadd.xlane.f32.xlu0 %v714_v9  ;;  %v1565_v9 = vld [vmem:[%s2627_s8 + $0x58] sm:$0xff] }
 0x6cc   :  { %v2003_v11 = vpack.c.bf16 %v1565_v9, %v1564_v8 }
 0x71e   :  { %v708_v10 = vpop.permute.xlu0 %707 }
 0x71f   :  { %v710_v15 = vmul.f32 %v708_v10, %v705_v60  ;;  %v1558_v60 = vld [vmem:[%s2625_s6 + $0x2] ss:$0 sm:$0xff] }
 0x721   :  { %v711_v16 = vsel %vm59_vm1, %v2325_v14, %v710_v15  ;;  %v1541_v14 = vld [vmem:[%s2622_s3 + $0x98] sm:$0xff] }
 0x722   :  { %1803 = vmatmul.mubr.msk.f32.vlgmr.msra.gmra.mrb[8].mxu0 %vm346_vm3, %v711_v16  ;;  %v1979_v23 = vpack.c.bf16 %v1541_v14, %v1540_v20  ;;  %v1171_v14 = vld [vmem:[#allocation2 + $0x30] sm:$0xff] }
 0x723   :  { %1847 = vmatprep.mubr.msk.f32.mxu0 %vm2124_vm0, %v2125_v1  ;;  %1989 = vmatpush3.bf16.msra.mxu0 %v1988_v33  ;;  %v1574_v33 = vld [vmem:[%s2622_s3 + $0xe0] sm:$0xff] }
 0x724   :  { %1990 = vmatprep.subr.bf16.mxu0 %v2123_v0 }
 0x727   :  { %1992 = vmatpush3.bf16.msra.mxu0 %v1991_v35  ;;  %v2015_v35 = vpack.c.bf16 %v1575_v34, %v1574_v33 }
 0x728   :  { %1993 = vmatprep.subr.bf16.mxu0 %v2123_v0 }
 0x72b   :  { %1995 = vmatpush3.bf16.msra.mxu0 %v1994_v38  ;;  %v1581_v38 = vld [vmem:[%s2624_s5 + $0xc0] sm:$0xff] }
 0x72c   :  { %1996 = vmatprep.subr.bf16.mxu0 %v2123_v0 }
 0x72f   :  { %1998 = vmatpush3.bf16.msra.mxu0 %v1997_v46  ;;  %v2027_v46 = vpack.c.bf16 %v1586_v45, %v1585_v44 }
 0x730   :  { %2005 = vmatprep.subr.bf16.mxu0 %v2123_v0 }
 0x7f5   :  { %v2429_v21 = vpop.f32.mrb[8].mxu0 }
 0x7f6   :  { %v1804_v22 = vpop.f32.mrb[9].mxu0  ;;  %1810 = vmatmul.mubr.msk.f32.vlgmr.msra.gmra.mrb[6].mxu1 %vm59_vm1, %v2429_v21 }
 0x7f7   :  { %1977 = vmatpush3.bf16.msra.mxu1 %v1976_v19  ;;  %1828 = vmatprep.mubr.msk.f32.mxu1 %vm2124_vm0, %v2125_v1  ;;  %v1172_v22 = vld [vmem:[#allocation2 + $0x38] sm:$0xff] }
 0x7f8   :  { %1978 = vmatprep.subr.bf16.mxu1 %v2123_v0 }
 0x7fb   :  { %1980 = vmatpush3.bf16.msra.mxu1 %v1979_v23  ;;  %v2006_v23 = vpack.c.bf16 %v1172_v22, %v1171_v14 }
 0x7fc   :  { %1981 = vmatprep.subr.bf16.mxu1 %v2123_v0 }
 0x7ff   :  { %1983 = vmatpush3.bf16.msra.mxu1 %v1982_v26 }
 0x800   :  { %1984 = vmatprep.subr.bf16.mxu1 %v2123_v0 }
 0x803   :  { %1986 = vmatpush3.bf16.msra.mxu1 %v1985_v29  ;;  %v1572_v29 = vld [vmem:[%s2622_s3 + $0xd0] sm:$0xff] }
 0x804   :  { %1999 = vmatprep.subr.bf16.mxu1 %v2123_v0 }
 0x8c9   :  { %v875_v40 = vpop.f32.mrb[6].mxu1 }
 0x8ca   :  { %v876_v41 = vadd.f32 %v1536_v39, %v875_v40  ;;  %v1811_v42 = vpop.f32.mrb[7].mxu1  ;;  %v1582_v39 = vld [vmem:[%s2624_s5 + $0xc8] sm:$0xff]  ;;  %v1583_v40 = vld [vmem:[%s2624_s5 + $0xd0] sm:$0xff] }
 0x8cb   :  { %v1584_v42 = vld [vmem:[%s2624_s5 + $0xd8] sm:$0xff] }
 0x8cc   :  { %v879_v43 = vmax.f32 %v876_v41, 0.0  ;;  %v2021_v41 = vpack.c.bf16 %v1582_v39, %v1581_v38 }
 0x8ce   :  { %1829 = vmatmul.mubr.msk.f32.vlgmr.msra.gmra.mrb[8].mxu1 %vm149_vm2, %v879_v43  ;;  %v2024_v43 = vpack.c.bf16 %v1584_v42, %v1583_v40 }
 0x8cf   :  { %1858 = vmatprep.mubr.msk.f32.mxu1 %vm2124_vm0, %v2125_v1  ;;  %2001 = vmatpush3.bf16.msra.mxu1 %v2000_v55  ;;  %v2030_v55 = vpack.c.bf16 %v1588_v54, %v1587_v53 }
 0x8d0   :  { %2002 = vmatprep.subr.bf16.mxu1 %v2123_v0 }
 0x8d3   :  { %2004 = vmatpush3.bf16.msra.mxu1 %v2003_v11 }
 0x8d4   :  { %2020 = vmatprep.subr.bf16.mxu1 %v2123_v0 }
 0x9a1   :  { %v966_v49 = vpop.f32.mrb[8].mxu1 }
 0x9a2   :  { %v967_v50 = vadd.f32 %v1547_v47, %v966_v49  ;;  %v1830_v51 = vpop.f32.mrb[9].mxu1  ;;  %v1568_v47 = vld [vmem:[%s2621_s2 + $0x3] ss:$0 sm:$0xff] }
 0x9a4   :  { %v970_v52 = vmax.f32 %v967_v50, 0.0 }
 0x9a6   :  { %1848 = vmatmul.mubr.msk.f32.vlgmr.msra.gmra.mrb[10].mxu0 %vm149_vm2, %v970_v52 }
 0x9a7   :  { %1865 = vmatprep.mubr.msk.f32.mxu0 %vm2124_vm0, %v2125_v1  ;;  %2007 = vmatpush3.bf16.msra.mxu0 %v2006_v23 }
 0x9a8   :  { %2008 = vmatprep.subr.bf16.mxu0 %v2123_v0 }
 0xa79   :  { %v1057_v62 = vpop.f32.mrb[10].mxu0 }
 0xa7a   :  { %v1058_v63 = vadd.f32 %v1558_v60, %v1057_v62  ;;  %v1849_v2 = vpop.f32.mrb[11].mxu0  ;;  %v1592_v60 = vld [vmem:[%s2626_s7 + $0x3] sm:$0x1] }
 0xa7b   :  { %v1590_v2 = vld [vmem:[%s2625_s6 + $0x3] ss:$0 sm:$0xff] }
 0xa7c   :  { %v1072_v3 = vmul.f32 %v1070_v61, %v1058_v63  ;;  %v1438_v61 = vmul.f32 3.0, %v1592_v60 }
 0xa7e   :  { %v1073_v5 = vadd.f32 2.0, %v1072_v3  ;;  %v1080_v6 = vadd.f32 %v1072_v3, %v2429_v21  ;;  %v1439_v62 = vmul.f32 1.442695, %v1438_v61 }
 0xa80   :  { %v1561_v7 = vmul.f32 -1.442695, %v1073_v5 }
 0xa82   :  { %2056 = vpow2.f32 %v1561_v7 }
 0xa8c   :  { %v2057_v12 = vpop.eup %2056 }
 0xa8d   :  { %v1077_v13 = vadd.f32 1.0, %v2057_v12 }
 0xa8f   :  { %2058 = vrcp.f32 %v1077_v13 }
 0xa99   :  { %v2059_v10 = vpop.eup %2058 }
 0xa9a   :  { %1082 = vrot.lane.b32.xlu1 %v2059_v10, %s2126_s12  ;;  %2060 = vlog2.f32 %v2059_v10 }
 0xa9b   :  { %2062 = vlog2.f32 %v2303_v4  ;;  %v1570_v4 = vld [vmem:[%s2622_s3 + $0xc0] sm:$0xff] }
 0xa9c   :  { %v2009_v28 = vpack.c.bf16 %v1571_v27, %v1570_v4  ;;  %2064 = vpow2.f32 %v1439_v62 }
 0xaa4   :  { %v2061_v15 = vpop.eup %2060 }
 0xaa5   :  { %v1088_v16 = vmul.f32 0.6931472, %v2061_v15  ;;  %v2063_v18 = vpop.eup %2062 }
 0xaa6   :  { %v338_v19 = vmul.f32 0.6931472, %v2063_v18  ;;  %v2065_v63 = vpop.eup %2064  ;;  %v716_v18 = vpop.xlane.xlu0 %715 }
 0xaa7   :  { %v1089_v17 = vsel %vm59_vm1, %v1088_v16, 0.0  ;;  %v1445_v3 = vrot.slane %v2065_v63, %v2289_v48 }
 0xaa8   :  { %1090 = vadd.xlane.f32.xlu0 %v1089_v17  ;;  %v339_v20 = vsel %vm59_vm1, %v338_v19, 0.0 }
 0xabe   :  { %340 = vadd.xlane.f32.xlu1 %v339_v20 }
 0xb0c   :  { %v1083_v24 = vpop.permute.xlu1 %1082 }
 0xb0d   :  { %v1085_v25 = vmul.f32 %v1083_v24, %v1080_v6 }
 0xb0f   :  { %v1086_v26 = vsel %vm59_vm1, %v2429_v21, %v1085_v25  ;;  %v1573_v21 = vld [vmem:[%s2622_s3 + $0xd8] sm:$0xff] }
 0xb10   :  { %1859 = vmatmul.mubr.msk.f32.vlgmr.msra.gmra.mrb[10].mxu1 %vm346_vm3, %v1086_v26  ;;  %v2012_v32 = vpack.c.bf16 %v1573_v21, %v1572_v29 }
 0xb11   :  { %1903 = vmatprep.mubr.msk.f32.mxu1 %vm2124_vm0, %v2125_v1  ;;  %2022 = vmatpush3.bf16.msra.mxu1 %v2021_v41 }
 0xb12   :  { %2023 = vmatprep.subr.bf16.mxu1 %v2123_v0 }
 0xb15   :  { %2025 = vmatpush3.bf16.msra.mxu1 %v2024_v43 }
 0xb16   :  { %2026 = vmatprep.subr.bf16.mxu1 %v2123_v0 }
 0xb19   :  { %2028 = vmatpush3.bf16.msra.mxu1 %v2027_v46 }
 0xb1a   :  { %2029 = vmatprep.subr.bf16.mxu1 %v2123_v0 }
 0xb1d   :  { %2031 = vmatpush3.bf16.msra.mxu1 %v2030_v55 }
 0xb35   :  { %v1091_v19 = vpop.xlane.xlu0 %1090 }
 0xbe3   :  { %v2535_v30 = vpop.f32.mrb[10].mxu1 }
 0xbe4   :  { %v1860_v31 = vpop.f32.mrb[11].mxu1  ;;  %1866 = vmatmul.mubr.msk.f32.vlgmr.msra.gmra.mrb[12].mxu0 %vm59_vm1, %v2535_v30 }
 0xbe5   :  { %2010 = vmatpush3.bf16.msra.mxu0 %v2009_v28  ;;  %1884 = vmatprep.mubr.msk.f32.mxu0 %vm2124_vm0, %v2125_v1  ;;  %v1576_v1 = vld [vmem:[%s2622_s3 + $0xf0] sm:$0xff] }
 0xbe6   :  { %2011 = vmatprep.subr.bf16.mxu0 %v2123_v0  ;;  %v2018_v37 = vpack.c.bf16 %v1577_v36, %v1576_v1 }
 0xbe9   :  { %2013 = vmatpush3.bf16.msra.mxu0 %v2012_v32 }
 0xbea   :  { %2014 = vmatprep.subr.bf16.mxu0 %v2123_v0 }
 0xbed   :  { %2016 = vmatpush3.bf16.msra.mxu0 %v2015_v35 }
 0xbee   :  { %2017 = vmatprep.subr.bf16.mxu0 %v2123_v0  ;;  %v1579_v0 = vld [vmem:[%s2623_s4 + $0x3] ss:$0 sm:$0xff]  ;;  %s2127_s4 = smov [#allocation5]  }
 0xbef   :  { %s1482_s6 = sshll.u32 %s2127_s4, 4  ;;  %s1483_s6 = int_to_ptr.vmem [resolvable:$true] %s1482_s6 }
 0xbf0   :  { %s2094_s7 = scalar_lea.vmem %s1483_s6, 128  ;;  %p2099_p9 = scmp.lt.s32.totalorder %s1483_s6, %s1483_s6 }
 0xbf1   :  { %2019 = vmatpush3.bf16.msra.mxu0 %v2018_v37  ;;  %p2095_p8 = scmp.ne.s32.totalorder %s1483_s6, %s2094_s7  ;;  %p2100_p10 = scmp.lt.s32.totalorder %s2094_s7, %s2094_s7 }
 0xbf3   :  { %p2101_p11 = por %p2100_p10, %p2099_p9 }
 0xbf5   :  { %p2102_p12 = pnand %p2101_p11, %p2095_p8 }
 0xcb7   :  { %v1250_v49 = vpop.f32.mrb[12].mxu0 }
 0xcb8   :  { %v1251_v50 = vadd.f32 %v1568_v47, %v1250_v49  ;;  %v1867_v51 = vpop.f32.mrb[13].mxu0 }
 0xcba   :  { %v1254_v52 = vmax.f32 %v1251_v50, 0.0 }
 0xcbc   :  { %1885 = vmatmul.mubr.msk.f32.vlgmr.msra.gmra.mrb[14].mxu0 %vm149_vm2, %v1254_v52 }
 0xd8f   :  { %v1341_v56 = vpop.f32.mrb[14].mxu0 }
 0xd90   :  { %v1342_v57 = vadd.f32 %v1579_v0, %v1341_v56  ;;  %v1886_v58 = vpop.f32.mrb[15].mxu0 }
 0xd92   :  { %v1345_v59 = vmax.f32 %v1342_v57, 0.0 }
 0xd94   :  { %1904 = vmatmul.mubr.msk.f32.vlgmr.msra.gmra.mrb[12].mxu1 %vm149_vm2, %v1345_v59 }
 0xe67   :  { %v1432_v5 = vpop.f32.mrb[12].mxu1 }
 0xe68   :  { %v1433_v6 = vadd.f32 %v1590_v2, %v1432_v5  ;;  %v1905_v7 = vpop.f32.mrb[13].mxu1 }
 0xe6a   :  { %v1447_v8 = vmul.f32 %v1445_v3, %v1433_v6 }
 0xe6c   :  { %v1448_v9 = vadd.f32 2.0, %v1447_v8  ;;  %v1455_v11 = vadd.f32 %v1447_v8, %v2535_v30 }
 0xe6e   :  { %v1593_v12 = vmul.f32 -1.442695, %v1448_v9 }
 0xe70   :  { %2066 = vpow2.f32 %v1593_v12 }
 0xe7a   :  { %v2067_v13 = vpop.eup %2066 }
 0xe7b   :  { %v1452_v10 = vadd.f32 1.0, %v2067_v13 }
 0xe7d   :  { %2068 = vrcp.f32 %v1452_v10 }
 0xe87   :  { %v2069_v15 = vpop.eup %2068 }
 0xe88   :  { %1457 = vrot.lane.b32.xlu0 %v2069_v15, %s2126_s12  ;;  %2070 = vlog2.f32 %v2069_v15 }
 0xe92   :  { %v2071_v16 = vpop.eup %2070 }
 0xe93   :  { %v1463_v17 = vmul.f32 0.6931472, %v2071_v16 }
 0xe95   :  { %v1464_v48 = vsel %vm59_vm1, %v1463_v17, 0.0 }
 0xe96   :  { %1465 = vadd.xlane.f32.xlu1 %v1464_v48 }
 0xefa   :  { %v1458_v20 = vpop.permute.xlu0 %1457 }
 0xefb   :  { %v1460_v14 = vmul.f32 %v1458_v20, %v1455_v11 }
 0xefd   :  { %v1461_v22 = vsel %vm59_vm1, %v2535_v30, %v1460_v14 }
 0xefe   :  { %1467 = vst.msk [vmem:[#allocation5] sm:$0xff] %vm346_vm3, %v1461_v22 }
 0xeff   :  { %2105 = shalt.err (!%p2102_p12)
}
 0xf00   :  { %s2106_s19 = scalar_lea.hbm %s2628_s9, 128 }
 0xf01   :  { %p2107_p13 = scmp.ne.s32.totalorder %s2628_s9, %s2106_s19  ;;  %p2110_p0 = scmp.lt.u32.totalorder %s2106_s19, %s2628_s9 }
 0xf03   :  { %p2112_p1 = pnand %p2110_p0, %p2107_p13 }
 0xf05   :  { %2115 = shalt.err (!%p2112_p1)
}
 0xf06   :  { %1485 = dma.vmem_to_hbm [thread:$0]  %s1483_s6, 128, %s2628_s9, [#allocation4]   ;;  %vm1468_vm4 = vcmask 7168   ;;  %v341_v23 = vpop.xlane.xlu1 %340  ;;  %vm1470_vm5 = vcmask 15360   ;;  %vm1472_vm6 = vcmask 23552   ;;  %vm1474_vm7 = vcmask 31744  }
 0xf07   :  { %v1469_v24 = vsel %vm1468_vm4, %v341_v23, %v716_v18 }
 0xf08   :  { %v1471_v25 = vsel %vm1470_vm5, %v1469_v24, %v1091_v19 }
 0xf23   :  { %v1466_v26 = vpop.xlane.xlu1 %1465 }
 0xf24   :  { %v1473_v4 = vsel %vm1472_vm6, %v1471_v25, %v1466_v26 }
 0xf25   :  { %1475 = vst.msk [vmem:[%s2629_s10] sm:$0xff] %vm1474_vm7, %v1473_v4 }
 0xf26   :  { %2118 = dma.done.wait [#allocation4], 128  }
 0xf27   :  { %2119 = vsyncadd [#allocation4], 4294967168 }
 0xf28   :  { %1493 = vsyncpa [#allocation3], 1 }
 0xf29   :  { %1494 = vsyncpa [#allocation4], 1 }

</bundles_post_ra>
